<compile_context>
chip_gen: v5e
topology: v5e:2x2
jax: 0.10.0
libtpu: 0.0.40
codegen_flags: <defaults>
</compile_context>

<pallas_src>
import jax
import jax.numpy as jnp
from jax import lax
from jax.experimental import pallas as pl
from jax.experimental.pallas import tpu as pltpu

_SQRT_HALF = 0.7071067811865476  # 1/sqrt(2)


def _round_up(a: int, m: int) -> int:
    return (a + m - 1) // m * m


def _make_expert_kernel(tk: int, acc_in_out: bool, approx_gelu: bool):
    """Build the kernel body.

    acc_in_out=True  -> output dtype is f32; accumulate directly into o_ref
                        (its block index is constant over k, so it is resident).
    acc_in_out=False -> accumulate in an f32 VMEM scratch, cast at finalize.
    """

    def _gelu(h):
        if approx_gelu:
            return jax.nn.gelu(h, approximate=True)     # tanh -> EUP
        return 0.5 * h * (1.0 + lax.erf(h * _SQRT_HALF))  # exact, torch default

    def _partial(x_ref, w1_ref, b1_ref, w2_ref):
        k = pl.program_id(1)
        off = pl.multiple_of(k * tk, tk)
        # ffn1 tile: (tm, Dp) @ (Dp, tk) on the MXU, f32 accumulate.
        h = jnp.dot(x_ref[...], w1_ref[...], preferred_element_type=jnp.float32)
        h = h + b1_ref[:, pl.ds(off, tk)]                # b1 slice (resident, f32)
        h = _gelu(h)
        # ffn2 partial product for this dff tile (operands back in compute dtype).
        return jnp.dot(h.astype(w2_ref.dtype), w2_ref[...],
                       preferred_element_type=jnp.float32)

    if acc_in_out:
        def kernel(x_ref, w1_ref, b1_ref, w2_ref, b2_ref, o_ref):
            k = pl.program_id(1)

            @pl.when(k == 0)
            def _init():
                o_ref[...] = jnp.zeros_like(o_ref)

            o_ref[...] += _partial(x_ref, w1_ref, b1_ref, w2_ref)

            @pl.when(k == pl.num_programs(1) - 1)
            def _finalize():
                o_ref[...] += b2_ref[...]

        return kernel

    def kernel(x_ref, w1_ref, b1_ref, w2_ref, b2_ref, o_ref, acc_ref):
        k = pl.program_id(1)

        @pl.when(k == 0)
        def _init():
            acc_ref[...] = jnp.zeros_like(acc_ref)

        acc_ref[...] += _partial(x_ref, w1_ref, b1_ref, w2_ref)

        @pl.when(k == pl.num_programs(1) - 1)
        def _finalize():
            o_ref[...] = (acc_ref[...] + b2_ref[...]).astype(o_ref.dtype)

    return kernel


def _vmem_capacity_bytes() -> int:
    try:
        cap = int(pltpu.get_tpu_info().vmem_capacity_bytes)
        return max(cap, 48 << 20)
    except Exception:
        return 64 << 20          # conservative (v7x-sized) fallback


def expert_forward(x, w1, b1, w2, b2, *, tm=None, tk=None,
                   compute_dtype=jnp.bfloat16, approx_gelu=False):
    """Fused Expert forward.

    x:  (batch, seq, d_model)
    w1: (d_model, dim_feedforward)   # stored transposed vs torch Linear.weight
    b1: (dim_feedforward,) or (1, dim_feedforward)
    w2: (dim_feedforward, d_model)
    b2: (d_model,) or (1, d_model)
    compute_dtype: dtype of the matmul operands (default bf16 for MXU peak /
        half the weight HBM stream); accumulation, biases and GELU are f32.
        Pass jnp.float32 for exact erf-GELU torch parity.
    approx_gelu: opt-in tanh GELU (EUP) instead of the exact erf polynomial.
    """
    B, S, D = x.shape
    dff = w1.shape[1]
    M = B * S

    cdt = jnp.dtype(compute_dtype) if compute_dtype is not None else jnp.dtype(x.dtype)
    out_dtype = jnp.dtype(x.dtype)
    itm = cdt.itemsize
    out_itm = out_dtype.itemsize
    acc_in_out = out_dtype == jnp.dtype(jnp.float32)

    # --- lane-dense padded feature dims --------------------------------------
    Dp = _round_up(D, 128)
    dff128 = _round_up(dff, 128)

    # --- tile selection (generation aware) ------------------------------------
    sub = {4: 8, 2: 16, 1: 32}.get(itm, 8)          # sublane multiple per dtype
    m_rounded = _round_up(M, sub)

    tm_eff = 768 if tm is None else tm              # amortizes weight streaming
    tm_eff = min(tm_eff, m_rounded)
    if tm_eff >= 256:
        tm_eff = (tm_eff // 256) * 256              # fill the 256-wide MXU
    else:
        tm_eff = max(sub, _round_up(tm_eff, sub))
    # Megacore: guarantee >= 2 row tiles when M is large enough (v7x 2 TCs).
    if M >= 512 and _round_up(M, tm_eff) // tm_eff < 2:
        tm_eff = min(tm_eff, max(256, _round_up((M + 1) // 2, 256)))

    tk_eff = 512 if tk is None else tk
    tk_eff = min(tk_eff, dff128)
    if tk_eff >= 256:
        tk_eff = (tk_eff // 256) * 256
    else:
        tk_eff = max(128, _round_up(tk_eff, 128))

    # VMEM budget: ~100 MiB on 128-MiB parts (v5e/v6e), ~40 MiB on v7x (64 MiB).
    cap = _vmem_capacity_bytes()
    vmem_budget = max(min(cap - (24 << 20), 100 << 20), 32 << 20)

    def vmem_bytes(tm_, tk_):
        fp_ = _round_up(dff128, tk_)
        stream = 2 * (Dp * tk_ * itm + tk_ * Dp * itm)       # W1/W2, double-buffered
        resident = (tm_ * Dp * itm                            # x tile (k-resident)
                    + tm_ * Dp * out_itm                      # out tile (k-resident)
                    + fp_ * 4 + Dp * 4)                       # b1 (full) + b2, f32
        acc = 0 if acc_in_out else tm_ * Dp * 4               # f32 scratch if needed
        return stream + resident + acc

    # Shrink order: tk 512 -> 256 first, then tm in 256 steps, only then below.
    while vmem_bytes(tm_eff, tk_eff) > vmem_budget:
        if tk_eff > 256:
            tk_eff = max(256, (tk_eff // 2 // 256) * 256)
        elif tm_eff > 256:
            tm_eff = max(256, tm_eff - 256)
        elif tk_eff > 128:
            tk_eff = 128
        elif tm_eff > sub:
            tm_eff = max(sub, ((tm_eff // 2) // sub) * sub)
        else:
            break

    Mp = _round_up(M, tm_eff)
    Fp = _round_up(dff128, tk_eff)

    # --- zero-pad operands (GELU(0)==0 and zero W2 rows => padding is exact) --
    x2d = jnp.pad(x.reshape(M, D), ((0, Mp - M), (0, Dp - D))).astype(cdt)
    w1p = jnp.pad(w1, ((0, Dp - D), (0, Fp - dff))).astype(cdt)
    w2p = jnp.pad(w2, ((0, Fp - dff), (0, Dp - D))).astype(cdt)
    b1p = jnp.pad(b1.reshape(1, dff).astype(jnp.float32), ((0, 0), (0, Fp - dff)))
    b2p = jnp.pad(b2.reshape(1, D).astype(jnp.float32), ((0, 0), (0, Dp - D)))

    grid = (Mp // tm_eff, Fp // tk_eff)
    n_row_tiles = grid[0]

    cost = pl.CostEstimate(
        flops=4 * Mp * Dp * Fp,                        # two matmuls: 2*M*D*F each
        transcendentals=Mp * Fp,                       # one erf/tanh per hidden elem
        bytes_accessed=(x2d.nbytes + Mp * Dp * out_itm
                        + n_row_tiles * (w1p.nbytes + w2p.nbytes)   # weight re-stream
                        + b1p.nbytes + b2p.nbytes),
    )

    est = vmem_bytes(tm_eff, tk_eff)
    # Headroom for possible second buffers of the k-resident x/out blocks + misc.
    slack = tm_eff * Dp * (itm + out_itm) + (4 << 20)
    vmem_limit = int(min(cap - (2 << 20), max(est + slack, 32 << 20)))

    kernel = _make_expert_kernel(tk_eff, acc_in_out, approx_gelu)
    scratch_shapes = [] if acc_in_out else [pltpu.VMEM((tm_eff, Dp), jnp.float32)]

    out = pl.pallas_call(
        kernel,
        out_shape=jax.ShapeDtypeStruct((Mp, Dp), out_dtype),
        grid_spec=pltpu.PrefetchScalarGridSpec(
            num_scalar_prefetch=0,
            grid=grid,
            in_specs=[
                pl.BlockSpec((tm_eff, Dp), lambda i, k: (i, 0)),   # x rows (resident over k)
                pl.BlockSpec((Dp, tk_eff), lambda i, k: (0, k)),   # W1 dff tile (streamed)
                pl.BlockSpec((1, Fp), lambda i, k: (0, 0)),        # b1 (resident, sliced in-kernel)
                pl.BlockSpec((tk_eff, Dp), lambda i, k: (k, 0)),   # W2 dff tile (streamed)
                pl.BlockSpec((1, Dp), lambda i, k: (0, 0)),        # b2 (resident)
            ],
            out_specs=pl.BlockSpec((tm_eff, Dp), lambda i, k: (i, 0)),
            scratch_shapes=scratch_shapes,
        ),
        compiler_params=pltpu.CompilerParams(
            dimension_semantics=("parallel", "arbitrary"),
            vmem_limit_bytes=vmem_limit,
        ),
        cost_estimate=cost,
    )(x2d, w1p, b1p, w2p, b2p)

    return out[:M, :D].reshape(B, S, D)


def _reference(x, w1, b1, w2, b2):
    h = jnp.einsum("bsd,df->bsf", x.astype(jnp.float32), w1.astype(jnp.float32))
    h = h + b1.reshape(-1).astype(jnp.float32)
    h = 0.5 * h * (1.0 + lax.erf(h / jnp.sqrt(2.0)))
    o = jnp.einsum("bsf,fd->bsd", h, w2.astype(jnp.float32))
    return o + b2.reshape(-1).astype(jnp.float32)


if __name__ == "__main__":
    # Small shapes consistent with the module's forward.
    batch, seq = 2, 8
    d_model, dim_feedforward = 32, 64

    key = jax.random.PRNGKey(0)
    kx, k1, kb1, k2, kb2 = jax.random.split(key, 5)

    x = jax.random.normal(kx, (batch, seq, d_model), dtype=jnp.float32)

    # Deterministic PyTorch-Linear-like uniform init, stored transposed as
    # [in_features, out_features].
    lim1 = 1.0 / jnp.sqrt(jnp.float32(d_model))
    w1 = jax.random.uniform(k1, (d_model, dim_feedforward),
                            minval=-lim1, maxval=lim1, dtype=jnp.float32)
    b1 = jax.random.uniform(kb1, (1, dim_feedforward),
                            minval=-lim1, maxval=lim1, dtype=jnp.float32)
    lim2 = 1.0 / jnp.sqrt(jnp.float32(dim_feedforward))
    w2 = jax.random.uniform(k2, (dim_feedforward, d_model),
                            minval=-lim2, maxval=lim2, dtype=jnp.float32)
    b2 = jax.random.uniform(kb2, (1, d_model),
                            minval=-lim2, maxval=lim2, dtype=jnp.float32)

    ref = _reference(x, w1, b1, w2, b2)

    # 1) Exact f32 operand path: matches erf-GELU torch reference tightly.
    out_f32 = jax.block_until_ready(
        expert_forward(x, w1, b1, w2, b2, compute_dtype=jnp.float32))
    assert out_f32.shape == (batch, seq, d_model)
    assert jnp.allclose(out_f32, ref, atol=1e-5, rtol=1e-5), "f32 mismatch vs reference"

    # 2) Default path: bf16 MXU operands, f32 accumulation (looser tolerance).
    out_bf16 = jax.block_until_ready(expert_forward(x, w1, b1, w2, b2))
    assert out_bf16.shape == (batch, seq, d_model)
    assert jnp.allclose(out_bf16, ref, atol=3e-2, rtol=3e-2), "bf16 mismatch vs reference"

    # 3) bf16 activations/output: exercises the f32-scratch accumulator variant.
    out_b = jax.block_until_ready(
        expert_forward(x.astype(jnp.bfloat16), w1, b1, w2, b2))
    assert out_b.dtype == jnp.bfloat16
    assert jnp.allclose(out_b.astype(jnp.float32), ref, atol=5e-2, rtol=5e-2), \
        "bf16-out mismatch vs reference"

    print("KERNEL_OK")
</pallas_src>

<mosaic_0001>
module attributes {stable_mosaic.version = 11 : i64} {
  func.func @kernel(%arg0: i32, %arg1: i32, %arg2: memref<16x128xf32, #tpu.memory_space<vmem>>, %arg3: memref<128x128xf32, #tpu.memory_space<vmem>>, %arg4: memref<1x128xf32, #tpu.memory_space<vmem>>, %arg5: memref<128x128xf32, #tpu.memory_space<vmem>>, %arg6: memref<1x128xf32, #tpu.memory_space<vmem>>, %arg7: memref<16x128xf32, #tpu.memory_space<vmem>>) attributes {dimension_semantics = [#tpu.dimension_semantics<parallel>, #tpu.dimension_semantics<arbitrary>], iteration_bounds = array<i64: 1, 1>, scalar_prefetch = 0 : i64, scratch_operands = 0 : i64, tpu.core_type = #tpu.core_type<tc>, window_params = [{transform_indices = @transform_0, window_bounds = array<i64: 16, 128>}, {transform_indices = @transform_1, window_bounds = array<i64: 128, 128>}, {pipeline_mode = #tpu.pipeline_mode<synchronous>, transform_indices = @transform_2, window_bounds = array<i64: 1, 128>}, {transform_indices = @transform_3, window_bounds = array<i64: 128, 128>}, {pipeline_mode = #tpu.pipeline_mode<synchronous>, transform_indices = @transform_4, window_bounds = array<i64: 1, 128>}, {transform_indices = @transform_5, window_bounds = array<i64: 16, 128>}]} {
    %c0_i32 = arith.constant 0 : i32
    %0 = arith.cmpi eq, %arg1, %c0_i32 : i32
    %1 = arith.extui %0 : i1 to i32
    %c0_i32_0 = arith.constant 0 : i32
    %2 = arith.cmpi ne, %1, %c0_i32_0 : i32
    scf.if %2 {
      %cst_17 = arith.constant 0.000000e+00 : f32
      %28 = vector.broadcast %cst_17 : f32 to vector<16x128xf32>
      %c0_18 = arith.constant 0 : index
      %c0_19 = arith.constant 0 : index
      %29 = vector.load %arg7[%c0_18, %c0_19] : memref<16x128xf32, #tpu.memory_space<vmem>>, vector<16x128xf32>
      tpu.vector_store %arg7[%c0_18, %c0_19], %28 {strides = array<i32>} : memref<16x128xf32, #tpu.memory_space<vmem>>, vector<16x128xf32>,
    } else {
    }
    %c0 = arith.constant 0 : index
    %c0_1 = arith.constant 0 : index
    %3 = vector.load %arg7[%c0, %c0_1] : memref<16x128xf32, #tpu.memory_space<vmem>>, vector<16x128xf32>
    %c128_i32 = arith.constant 128 : i32
    %4 = arith.muli %arg1, %c128_i32 : i32
    %5 = tpu.assume_multiple %4, 128 : i32
    %c0_2 = arith.constant 0 : index
    %c0_3 = arith.constant 0 : index
    %6 = vector.load %arg2[%c0_2, %c0_3] : memref<16x128xf32, #tpu.memory_space<vmem>>, vector<16x128xf32>
    %c0_4 = arith.constant 0 : index
    %c0_5 = arith.constant 0 : index
    %7 = vector.load %arg3[%c0_4, %c0_5] : memref<128x128xf32, #tpu.memory_space<vmem>>, vector<128x128xf32>
    %cst = arith.constant dense<0.000000e+00> : vector<16x128xf32>
    %8 = tpu.matmul %6, %7, %cst {dimension_numbers = #tpu.dot_dimension_numbers<[1], [0], [0], [1], [0, 0, 1, 1], [], []>} : vector<16x128xf32>, vector<128x128xf32>, vector<16x128xf32> -> vector<16x128xf32>
    %c0_6 = arith.constant 0 : index
    %9 = arith.index_cast %5 : i32 to index
    %10 = vector.load %arg4[%c0_6, %9] : memref<1x128xf32, #tpu.memory_space<vmem>>, vector<1x128xf32>
    %11 = vector.broadcast %10 : vector<1x128xf32> to vector<16x128xf32>
    %12 = arith.addf %8, %11 : vector<16x128xf32>
    %cst_7 = arith.constant 5.000000e-01 : f32
    %13 = vector.broadcast %cst_7 : f32 to vector<16x128xf32>
    %14 = arith.mulf %13, %12 : vector<16x128xf32>
    %cst_8 = arith.constant 0.707106769 : f32
    %15 = vector.broadcast %cst_8 : f32 to vector<16x128xf32>
    %16 = arith.mulf %12, %15 : vector<16x128xf32>
    %17 = math.erf %16 : vector<16x128xf32>
    %cst_9 = arith.constant 1.000000e+00 : f32
    %18 = vector.broadcast %cst_9 : f32 to vector<16x128xf32>
    %19 = arith.addf %18, %17 : vector<16x128xf32>
    %20 = arith.mulf %14, %19 : vector<16x128xf32>
    %c0_10 = arith.constant 0 : index
    %c0_11 = arith.constant 0 : index
    %21 = vector.load %arg5[%c0_10, %c0_11] : memref<128x128xf32, #tpu.memory_space<vmem>>, vector<128x128xf32>
    %cst_12 = arith.constant dense<0.000000e+00> : vector<16x128xf32>
    %22 = tpu.matmul %20, %21, %cst_12 {dimension_numbers = #tpu.dot_dimension_numbers<[1], [0], [0], [1], [0, 0, 1, 1], [], []>} : vector<16x128xf32>, vector<128x128xf32>, vector<16x128xf32> -> vector<16x128xf32>
    %23 = arith.addf %3, %22 : vector<16x128xf32>
    %c0_13 = arith.constant 0 : index
    %c0_14 = arith.constant 0 : index
    %24 = vector.load %arg7[%c0_13, %c0_14] : memref<16x128xf32, #tpu.memory_space<vmem>>, vector<16x128xf32>
    tpu.vector_store %arg7[%c0_13, %c0_14], %23 {strides = array<i32>} : memref<16x128xf32, #tpu.memory_space<vmem>>, vector<16x128xf32>,
    %c0_i32_15 = arith.constant 0 : i32
    %25 = arith.cmpi eq, %arg1, %c0_i32_15 : i32
    %26 = arith.extui %25 : i1 to i32
    %c0_i32_16 = arith.constant 0 : i32
    %27 = arith.cmpi ne, %26, %c0_i32_16 : i32
    scf.if %27 {
      %c0_17 = arith.constant 0 : index
      %c0_18 = arith.constant 0 : index
      %28 = vector.load %arg7[%c0_17, %c0_18] : memref<16x128xf32, #tpu.memory_space<vmem>>, vector<16x128xf32>
      %c0_19 = arith.constant 0 : index
      %c0_20 = arith.constant 0 : index
      %29 = vector.load %arg6[%c0_19, %c0_20] : memref<1x128xf32, #tpu.memory_space<vmem>>, vector<1x128xf32>
      %30 = vector.broadcast %29 : vector<1x128xf32> to vector<16x128xf32>
      %31 = arith.addf %28, %30 : vector<16x128xf32>
      %c0_21 = arith.constant 0 : index
      %c0_22 = arith.constant 0 : index
      %32 = vector.load %arg7[%c0_21, %c0_22] : memref<16x128xf32, #tpu.memory_space<vmem>>, vector<16x128xf32>
      tpu.vector_store %arg7[%c0_21, %c0_22], %31 {strides = array<i32>} : memref<16x128xf32, #tpu.memory_space<vmem>>, vector<16x128xf32>,
    } else {
    }
    return
  }
  func.func @transform_0(%arg0: i32, %arg1: i32) -> (i32, i32) {
    %c0_i32 = arith.constant 0 : i32
    %c0_i32_0 = arith.constant 0 : i32
    return %arg0, %c0_i32 : i32, i32
  }
  func.func @transform_1(%arg0: i32, %arg1: i32) -> (i32, i32) {
    %c0_i32 = arith.constant 0 : i32
    %c0_i32_0 = arith.constant 0 : i32
    return %c0_i32, %arg1 : i32, i32
  }
  func.func @transform_2(%arg0: i32, %arg1: i32) -> (i32, i32) {
    %c0_i32 = arith.constant 0 : i32
    %c0_i32_0 = arith.constant 0 : i32
    %c0_i32_1 = arith.constant 0 : i32
    return %c0_i32, %c0_i32_0 : i32, i32
  }
  func.func @transform_3(%arg0: i32, %arg1: i32) -> (i32, i32) {
    %c0_i32 = arith.constant 0 : i32
    %c0_i32_0 = arith.constant 0 : i32
    return %arg1, %c0_i32 : i32, i32
  }
  func.func @transform_4(%arg0: i32, %arg1: i32) -> (i32, i32) {
    %c0_i32 = arith.constant 0 : i32
    %c0_i32_0 = arith.constant 0 : i32
    %c0_i32_1 = arith.constant 0 : i32
    return %c0_i32, %c0_i32_0 : i32, i32
  }
  func.func @transform_5(%arg0: i32, %arg1: i32) -> (i32, i32) {
    %c0_i32 = arith.constant 0 : i32
    %c0_i32_0 = arith.constant 0 : i32
    return %arg0, %c0_i32 : i32, i32
  }
}

</mosaic_0001>

<bundles_post_ra>
// kernel: tpu_custom_call.1
= control target key start
LH: loop header
LB: loop body
LE: loop exit
PB: predicated region body
PF: predicated region fallthrough
CT: control target
= control target key end

     0   :  { %10 = vsyncpa [#allocation3], 0  ;;  %s535_s0 = inlined_call_operand.hbm [shape: f32[16,128], index: 0, kind: input, shape index: {}]   ;;  %s536_s1 = inlined_call_operand.hbm [shape: f32[128,128], index: 1, kind: input, shape index: {}]   ;;  %s537_s2 = inlined_call_operand.vmem [shape: f32[1,128], index: 2, kind: input, shape index: {}]   ;;  %s538_s3 = inlined_call_operand.hbm [shape: f32[128,128], index: 3, kind: input, shape index: {}]   ;;  %s539_s4 = inlined_call_operand.vmem [shape: f32[1,128], index: 4, kind: input, shape index: {}]   ;;  %s540_s5 = inlined_call_operand.hbm [shape: f32[16,128], index: 5, kind: output, shape index: {}]  }
   0x1   :  { %11 = vsyncpa [#allocation6], 0 }
   0x2   :  { %12 = vsyncpa [#allocation4], 0  ;;  %s30_s20 = sshll.u32 %s536_s1, 4  ;;  %s439_s21 = smov [#allocation5]   ;;  %s31_s20 = int_to_ptr.hbm [resolvable:$true] %s30_s20 }
   0x3   :  { %s32_s22 = sshll.u32 %s439_s21, 4  ;;  %s17_s25 = sshll.u32 %s535_s0, 4  ;;  %s33_s22 = int_to_ptr.vmem [resolvable:$true] %s32_s22  ;;  %s18_s25 = int_to_ptr.hbm [resolvable:$true] %s17_s25 }
   0x4   :  { %s440_s26 = smov 128   ;;  %s441_s27 = smov 8  }
   0x5   :  { %38 = dma.hbm_to_vmem [thread:$0]  %s31_s20, 2048, %s33_s22, [#allocation6], %s440_s26, %s440_s26, %s441_s27  }
   0x6   :  { %s442_s28 = smov [#allocation2]   ;;  %s45_s1 = sshll.u32 %s538_s3, 4  ;;  %s46_s1 = int_to_ptr.hbm [resolvable:$true] %s45_s1 }
   0x7   :  { %s19_s29 = sshll.u32 %s442_s28, 4  ;;  %s443_s0 = smov [#allocation7]   ;;  %s20_s29 = int_to_ptr.vmem [resolvable:$true] %s19_s29 }
   0x8   :  { %25 = dma.hbm_to_vmem [thread:$0]  %s18_s25, 256, %s20_s29, [#allocation3], %s440_s26, %s440_s26, %s441_s27  }
   0x9   :  { %s47_s7 = sshll.u32 %s443_s0, 4  ;;  %s48_s7 = int_to_ptr.vmem [resolvable:$true] %s47_s7 }
   0xa   :  { %53 = dma.hbm_to_vmem [thread:$0]  %s46_s1, 2048, %s48_s7, [#allocation6], %s440_s26, %s440_s26, %s441_s27  }
   0xb   :  { %433 = dma.done.wait [#allocation3], 256  }
   0xc   :  { %434 = vsyncadd [#allocation3], 4294967040 }
   0xd   :  { %435 = dma.done.wait [#allocation6], 4096  }
   0xe   :  { %436 = vsyncadd [#allocation6], 4294963200  ;;  %v94_v0 = vld [vmem:[#allocation5 + $0x78] sm:$0xff]  ;;  %v93_v1 = vld [vmem:[#allocation5 + $0x70] sm:$0xff]  ;;  %s444_s10 = smov [#allocation8]   ;;  %s275_s14 = sshll.u32 %s540_s5, 4  ;;  %s276_s14 = int_to_ptr.hbm [resolvable:$true] %s275_s14 }
   0xf   :  { %102 = vmatpush.msra.mxu0 %v94_v0  ;;  %292 = vmatpush.msra.mxu2 %v94_v0  ;;  %v92_v2 = vld [vmem:[#allocation5 + $0x68] sm:$0xff]  ;;  %v91_v3 = vld [vmem:[#allocation5 + $0x60] sm:$0xff]  ;;  %v90_v4 = vld [vmem:[#allocation5 + $0x58] sm:$0xff]  ;;  %s273_s11 = sshll.u32 %s444_s10, 4  ;;  %s274_s11 = int_to_ptr.vmem [resolvable:$true] %s273_s11 }
  0x10   :  { %v89_v5 = vld [vmem:[#allocation5 + $0x50] sm:$0xff]  ;;  %v88_v6 = vld [vmem:[#allocation5 + $0x48] sm:$0xff]  ;;  %v87_v7 = vld [vmem:[#allocation5 + $0x40] sm:$0xff] }
  0x11   :  { %103 = vmatpush.msra.mxu0 %v93_v1  ;;  %293 = vmatpush.msra.mxu2 %v93_v1  ;;  %v86_v8 = vld [vmem:[#allocation5 + $0x38] sm:$0xff]  ;;  %v85_v9 = vld [vmem:[#allocation5 + $0x30] sm:$0xff]  ;;  %v84_v10 = vld [vmem:[#allocation5 + $0x28] sm:$0xff] }
  0x12   :  { %v83_v11 = vld [vmem:[#allocation5 + $0x20] sm:$0xff]  ;;  %v82_v12 = vld [vmem:[#allocation5 + $0x18] sm:$0xff]  ;;  %v81_v13 = vld [vmem:[#allocation5 + $0x10] sm:$0xff] }
  0x13   :  { %104 = vmatpush.msra.mxu0 %v92_v2  ;;  %294 = vmatpush.msra.mxu2 %v92_v2  ;;  %v80_v14 = vld [vmem:[#allocation5 + $0x8] sm:$0xff]  ;;  %v79_v15 = vld [vmem:[#allocation5] sm:$0xff]  ;;  %v77_v16 = vld [vmem:[#allocation2] sm:$0xff] }
  0x14   :  { %v78_v17 = vld [vmem:[#allocation2 + $0x8] sm:$0xff]  ;;  %v227_v19 = vld [vmem:[#allocation7 + $0x70] sm:$0xff]  ;;  %v226_v20 = vld [vmem:[#allocation7 + $0x68] sm:$0xff] }
  0x15   :  { %105 = vmatpush.msra.mxu0 %v91_v3  ;;  %295 = vmatpush.msra.mxu2 %v91_v3  ;;  %v228_v18 = vld [vmem:[#allocation7 + $0x78] sm:$0xff]  ;;  %v225_v21 = vld [vmem:[#allocation7 + $0x60] sm:$0xff]  ;;  %v331_v22 = vld [vmem:[%s537_s2] ss:$0 sm:$0xff] }
  0x16   :  { %229 = vmatpush.msra.mxu1 %v228_v18  ;;  %308 = vmatpush.msra.mxu3 %v228_v18  ;;  %v224_v23 = vld [vmem:[#allocation7 + $0x58] sm:$0xff]  ;;  %v223_v25 = vld [vmem:[#allocation7 + $0x50] sm:$0xff]  ;;  %v222_v27 = vld [vmem:[#allocation7 + $0x48] sm:$0xff] }
  0x17   :  { %106 = vmatpush.msra.mxu0 %v90_v4  ;;  %296 = vmatpush.msra.mxu2 %v90_v4  ;;  %v221_v29 = vld [vmem:[#allocation7 + $0x40] sm:$0xff]  ;;  %v220_v30 = vld [vmem:[#allocation7 + $0x38] sm:$0xff]  ;;  %v219_v33 = vld [vmem:[#allocation7 + $0x30] sm:$0xff] }
  0x18   :  { %230 = vmatpush.msra.mxu1 %v227_v19  ;;  %309 = vmatpush.msra.mxu3 %v227_v19  ;;  %v218_v36 = vld [vmem:[#allocation7 + $0x28] sm:$0xff]  ;;  %v217_v39 = vld [vmem:[#allocation7 + $0x20] sm:$0xff]  ;;  %v216_v43 = vld [vmem:[#allocation7 + $0x18] sm:$0xff] }
  0x19   :  { %107 = vmatpush.msra.mxu0 %v89_v5  ;;  %297 = vmatpush.msra.mxu2 %v89_v5  ;;  %v215_v47 = vld [vmem:[#allocation7 + $0x10] sm:$0xff]  ;;  %v214_v52 = vld [vmem:[#allocation7 + $0x8] sm:$0xff]  ;;  %v213_v56 = vld [vmem:[#allocation7] sm:$0xff] }
  0x1a   :  { %231 = vmatpush.msra.mxu1 %v226_v20  ;;  %310 = vmatpush.msra.mxu3 %v226_v20 }
  0x1b   :  { %108 = vmatpush.msra.mxu0 %v88_v6  ;;  %298 = vmatpush.msra.mxu2 %v88_v6 }
  0x1c   :  { %232 = vmatpush.msra.mxu1 %v225_v21  ;;  %311 = vmatpush.msra.mxu3 %v225_v21 }
  0x1d   :  { %109 = vmatpush.msra.mxu0 %v87_v7  ;;  %299 = vmatpush.msra.mxu2 %v87_v7 }
  0x1e   :  { %233 = vmatpush.msra.mxu1 %v224_v23  ;;  %312 = vmatpush.msra.mxu3 %v224_v23 }
  0x1f   :  { %110 = vmatpush.msra.mxu0 %v86_v8  ;;  %300 = vmatpush.msra.mxu2 %v86_v8 }
  0x20   :  { %234 = vmatpush.msra.mxu1 %v223_v25  ;;  %313 = vmatpush.msra.mxu3 %v223_v25 }
  0x21   :  { %111 = vmatpush.msra.mxu0 %v85_v9  ;;  %301 = vmatpush.msra.mxu2 %v85_v9 }
  0x22   :  { %235 = vmatpush.msra.mxu1 %v222_v27  ;;  %314 = vmatpush.msra.mxu3 %v222_v27 }
  0x23   :  { %112 = vmatpush.msra.mxu0 %v84_v10  ;;  %302 = vmatpush.msra.mxu2 %v84_v10 }
  0x24   :  { %236 = vmatpush.msra.mxu1 %v221_v29  ;;  %315 = vmatpush.msra.mxu3 %v221_v29 }
  0x25   :  { %113 = vmatpush.msra.mxu0 %v83_v11  ;;  %303 = vmatpush.msra.mxu2 %v83_v11 }
  0x26   :  { %237 = vmatpush.msra.mxu1 %v220_v30  ;;  %316 = vmatpush.msra.mxu3 %v220_v30 }
  0x27   :  { %114 = vmatpush.msra.mxu0 %v82_v12  ;;  %304 = vmatpush.msra.mxu2 %v82_v12 }
  0x28   :  { %238 = vmatpush.msra.mxu1 %v219_v33  ;;  %317 = vmatpush.msra.mxu3 %v219_v33 }
  0x29   :  { %115 = vmatpush.msra.mxu0 %v81_v13  ;;  %305 = vmatpush.msra.mxu2 %v81_v13 }
  0x2a   :  { %239 = vmatpush.msra.mxu1 %v218_v36  ;;  %318 = vmatpush.msra.mxu3 %v218_v36 }
  0x2b   :  { %116 = vmatpush.msra.mxu0 %v80_v14  ;;  %306 = vmatpush.msra.mxu2 %v80_v14 }
  0x2c   :  { %240 = vmatpush.msra.mxu1 %v217_v39  ;;  %319 = vmatpush.msra.mxu3 %v217_v39 }
  0x2d   :  { %117 = vmatpush.msra.mxu0 %v79_v15  ;;  %307 = vmatpush.msra.mxu2 %v79_v15 }
  0x2e   :  { %118 = vmatmul.f32.vlgmr.msra.gmra.mxu0 %v77_v16  ;;  %121 = vmatmul.f32.vlgmr.msra.gmra.mxu2 %v78_v17 }
  0x2f   :  { %241 = vmatpush.msra.mxu1 %v216_v43  ;;  %320 = vmatpush.msra.mxu3 %v216_v43 }
  0x31   :  { %242 = vmatpush.msra.mxu1 %v215_v47  ;;  %321 = vmatpush.msra.mxu3 %v215_v47 }
  0x33   :  { %243 = vmatpush.msra.mxu1 %v214_v52  ;;  %322 = vmatpush.msra.mxu3 %v214_v52 }
  0x35   :  { %244 = vmatpush.msra.mxu1 %v213_v56  ;;  %323 = vmatpush.msra.mxu3 %v213_v56  ;;  %v332_v56 = vld [vmem:[%s539_s4] ss:$0 sm:$0xff] }
  0xab   :  { %v119_v24 = vpop.f32.mrf.mxu0 }
  0xac   :  { %v496_v26 = vadd.f32 %v331_v22, %v119_v24 }
  0xae   :  { %v499_v28 = vmul.f32 0.70710677, %v496_v26  ;;  %v125_v47 = vmul.f32 0.5, %v496_v26 }
  0xb0   :  { %v129_v31 = vmul.f32 %v499_v28, %v499_v28 }
  0xb1   :  { %v122_v32 = vpop.f32.mrf.mxu2 }
  0xb2   :  { %v503_v34 = vmin.f32 %v129_v31, 16.0  ;;  %v505_v35 = vadd.f32 %v331_v22, %v122_v32 }
  0xb4   :  { %v131_v37 = vmul.f32 2.1237322e-06, %v503_v34  ;;  %v509_v38 = vmul.f32 0.70710677, %v505_v35  ;;  %v142_v40 = vmul.f32 3.8918573e-05, %v503_v34 }
  0xb6   :  { %v132_v41 = vadd.f32 0.00028619796, %v131_v37  ;;  %v169_v42 = vmul.f32 %v509_v38, %v509_v38  ;;  %v143_v44 = vadd.f32 0.001143296, %v142_v40 }
  0xb8   :  { %v133_v45 = vmul.f32 %v132_v41, %v503_v34  ;;  %v170_v46 = vmin.f32 %v169_v42, 16.0  ;;  %v144_v48 = vmul.f32 %v143_v44, %v503_v34 }
  0xba   :  { %v171_v49 = vmul.f32 2.1237322e-06, %v170_v46  ;;  %v182_v50 = vmul.f32 3.8918573e-05, %v170_v46  ;;  %v134_v51 = vadd.f32 0.0036580483, %v133_v45 }
  0xbb   :  { %v145_v53 = vadd.f32 0.014752088, %v144_v48 }
  0xbc   :  { %v172_v54 = vadd.f32 0.00028619796, %v171_v49  ;;  %v183_v55 = vadd.f32 0.001143296, %v182_v50  ;;  %v135_v60 = vmul.f32 %v134_v51, %v503_v34 }
  0xbd   :  { %v146_v57 = vmul.f32 %v145_v53, %v503_v34  ;;  %v126_v53 = vmul.f32 0.5, %v505_v35 }
  0xbe   :  { %v173_v58 = vmul.f32 %v172_v54, %v170_v46  ;;  %v184_v59 = vmul.f32 %v183_v55, %v170_v46  ;;  %v136_v2 = vadd.f32 0.05243302, %v135_v60 }
  0xbf   :  { %v147_v61 = vadd.f32 0.112945676, %v146_v57 }
  0xc0   :  { %v174_v62 = vadd.f32 0.0036580483, %v173_v58  ;;  %v185_v63 = vadd.f32 0.014752088, %v184_v59  ;;  %v137_v8 = vmul.f32 %v136_v2, %v503_v34 }
  0xc1   :  { %v148_v0 = vmul.f32 %v147_v61, %v503_v34 }
  0xc2   :  { %v186_v1 = vmul.f32 %v185_v63, %v170_v46  ;;  %v175_v4 = vmul.f32 %v174_v62, %v170_v46  ;;  %v138_v13 = vadd.f32 0.18741608, %v137_v8 }
  0xc3   :  { %v149_v3 = vadd.f32 0.4994258, %v148_v0 }
  0xc4   :  { %v187_v5 = vadd.f32 0.112945676, %v186_v1  ;;  %v176_v10 = vadd.f32 0.05243302, %v175_v4  ;;  %v139_v17 = vmul.f32 %v138_v13, %v503_v34 }
  0xc5   :  { %v150_v6 = vmul.f32 %v149_v3, %v503_v34 }
  0xc6   :  { %v188_v7 = vmul.f32 %v187_v5, %v170_v46  ;;  %v177_v14 = vmul.f32 %v176_v10, %v170_v46  ;;  %v140_v21 = vadd.f32 1.1283791, %v139_v17 }
  0xc7   :  { %v151_v9 = vadd.f32 1.0, %v150_v6 }
  0xc8   :  { %v189_v11 = vadd.f32 0.4994258, %v188_v7  ;;  %v178_v18 = vadd.f32 0.18741608, %v177_v14  ;;  %v141_v31 = vmul.f32 %v140_v21, %v499_v28 }
  0xc9   :  { %333 = vrcp.f32 %v151_v9  ;;  %v163_v22 = vand.u32 2147483648, %v151_v9  ;;  %v161_v27 = vand.u32 2147483647, %v151_v9  ;;  %vm157_vm1 = vweird.f32 %v151_v9 }
  0xca   :  { %v190_v12 = vmul.f32 %v189_v11, %v170_v46  ;;  %v179_v24 = vmul.f32 %v178_v18, %v170_v46 }
  0xcb   :  { %v164_v32 = vor.u32 1.1754944e-38, %v163_v22  ;;  %vm162_vm3 = vcmp.eq.f32.partialorder %v161_v27, 8.507059e+37 }
  0xcc   :  { %v191_v15 = vadd.f32 1.0, %v190_v12  ;;  %v180_v36 = vadd.f32 1.1283791, %v179_v24 }
  0xce   :  { %335 = vrcp.f32 %v191_v15  ;;  %v203_v37 = vand.u32 2147483648, %v191_v15  ;;  %v201_v41 = vand.u32 2147483647, %v191_v15  ;;  %vm197_vm5 = vweird.f32 %v191_v15 }
  0xcf   :  { %v334_v16 = vpop.eup %333  ;;  %v181_v46 = vmul.f32 %v180_v36, %v509_v38 }
  0xd0   :  { %v153_v19 = vmul.f32 %v334_v16, %v151_v9  ;;  %vm158_vm0 = vweird.f32 %v334_v16  ;;  %v204_v45 = vor.u32 1.1754944e-38, %v203_v37  ;;  %vm202_vm7 = vcmp.eq.f32.partialorder %v201_v41, 8.507059e+37 }
  0xd1   :  { %vm159_vm2 = vmor %vm157_vm1, %vm158_vm0 }
  0xd2   :  { %v154_v20 = vsub.f32 1.0, %v153_v19 }
  0xd4   :  { %v336_v23 = vpop.eup %335  ;;  %v155_v25 = vmul.f32 %v334_v16, %v154_v20 }
  0xd5   :  { %v193_v29 = vmul.f32 %v336_v23, %v191_v15  ;;  %vm198_vm4 = vweird.f32 %v336_v23 }
  0xd6   :  { %v156_v30 = vadd.f32 %v334_v16, %v155_v25  ;;  %vm199_vm6 = vmor %vm197_vm5, %vm198_vm4 }
  0xd7   :  { %v194_v33 = vsub.f32 1.0, %v193_v29 }
  0xd8   :  { %v160_v34 = vsel %vm159_vm2, %v334_v16, %v156_v30 }
  0xd9   :  { %v165_v39 = vsel %vm162_vm3, %v164_v32, %v160_v34  ;;  %v195_v40 = vmul.f32 %v336_v23, %v194_v33 }
  0xda   :  { %v166_v42 = vmul.f32 %v165_v39, %v141_v31 }
  0xdb   :  { %v196_v43 = vadd.f32 %v336_v23, %v195_v40 }
  0xdc   :  { %v290_v44 = vclamps-f32 %v166_v42, 1.0 }
  0xdd   :  { %v200_v28 = vsel %vm199_vm6, %v336_v23, %v196_v43 }
  0xde   :  { %v209_v48 = vadd.f32 1.0, %v290_v44  ;;  %v205_v49 = vsel %vm202_vm7, %v204_v45, %v200_v28 }
  0xdf   :  { %v206_v50 = vmul.f32 %v205_v49, %v181_v46 }
  0xe0   :  { %v211_v51 = vmul.f32 %v209_v48, %v125_v47 }
  0xe1   :  { %v291_v52 = vclamps-f32 %v206_v50, 1.0 }
  0xe2   :  { %245 = vmatmul.f32.vlgmr.msra.gmra.mxu1 %v211_v51 }
  0xe3   :  { %v210_v54 = vadd.f32 1.0, %v291_v52 }
  0xe5   :  { %v212_v55 = vmul.f32 %v210_v54, %v126_v53 }
  0xe7   :  { %248 = vmatmul.f32.vlgmr.msra.gmra.mxu3 %v212_v55 }
 0x15f   :  { %v246_v38 = vpop.f32.mrf.mxu1 }
 0x160   :  { %v265_v57 = vadd.f32 %v332_v56, %v246_v38 }
 0x162   :  { %267 = vst [vmem:[#allocation8] sm:$0xff] %v265_v57 }
 0x16a   :  { %v249_v58 = vpop.f32.mrf.mxu3 }
 0x16b   :  { %v266_v26 = vadd.f32 %v332_v56, %v249_v58 }
 0x16d   :  { %268 = vst [vmem:[#allocation8 + $0x8] sm:$0xff] %v266_v26 }
 0x16e   :  { %281 = dma.vmem_to_hbm [thread:$0]  %s274_s11, 256, %s276_s14, [#allocation4], %s440_s26, %s440_s26, %s441_s27  }
 0x16f   :  { %437 = dma.done.wait [#allocation4], 256  }
 0x170   :  { %438 = vsyncadd [#allocation4], 4294967040 }
 0x171   :  { %286 = vsyncpa [#allocation3], 1 }
 0x172   :  { %287 = vsyncpa [#allocation6], 1 }
 0x173   :  { %288 = vsyncpa [#allocation4], 1 }

</bundles_post_ra>
